<compile_context>
chip_gen: v7x
topology: tpu7x:2x2x1
jax: 0.10.0
libtpu: 0.0.40
codegen_flags: <defaults>
</compile_context>

<pallas_src>
import jax
import jax.numpy as jnp
from jax.experimental import pallas as pl
from jax.experimental.pallas import tpu as pltpu

LANE = 128  # lane width / padded hidden size


def _round_up(x, m):
    return (x + m - 1) // m * m


def ncf_kernel(ue_ref, ie_ref,
               w1u_ref, w1i_ref, b1_ref,
               w2_ref, b2_ref,
               w3_ref, b3_ref,
               w4_ref, b4_ref,
               wo_ref, bo_ref,
               out_ref):
    """Fused NCF MLP tower + output layer, batch-on-lanes, one (TB,) block.

    ue_ref/ie_ref : (TB, E)     bf16 gathered user / item embedding rows
    w1u/w1i       : (128, E)    bf16 transposed + zero-padded first-layer weight
    w2..w4        : (128, 128)  bf16 transposed + zero-padded hidden weights
    b1..b4        : (128, 1)    f32 zero-padded biases (feature on sublanes)
    wo_ref        : (8, 128)    bf16 output weights, identical rows
    bo_ref        : (8, 1)      f32 output bias (replicated)
    out_ref       : (1, TB)     f32, batch on lanes (lane-dense writeback)
    """
    # Layer 1: contract over E on the last axis of both operands so the result
    # is already (128, TB) feature-on-sublanes / batch-on-lanes.  No concat,
    # no activation transpose.
    h = (jnp.einsum('oe,be->ob', w1u_ref[...], ue_ref[...],
                    preferred_element_type=jnp.float32)
         + jnp.einsum('oe,be->ob', w1i_ref[...], ie_ref[...],
                      preferred_element_type=jnp.float32)
         + b1_ref[...])
    h = jnp.maximum(h, 0.0).astype(jnp.bfloat16)

    # Layers 2..4: aligned (128,128)@(128,TB) MXU matmuls, f32 accumulation,
    # bf16 activations between layers.
    h = jnp.maximum(
        jnp.dot(w2_ref[...], h, preferred_element_type=jnp.float32) + b2_ref[...],
        0.0).astype(jnp.bfloat16)
    h = jnp.maximum(
        jnp.dot(w3_ref[...], h, preferred_element_type=jnp.float32) + b3_ref[...],
        0.0).astype(jnp.bfloat16)
    h = jnp.maximum(
        jnp.dot(w4_ref[...], h, preferred_element_type=jnp.float32) + b4_ref[...],
        0.0).astype(jnp.bfloat16)

    # Output layer: (8,128) bf16 @ (128,TB) bf16 -> (8,TB) f32.  All rows of
    # wo are identical, so row 0 is the prediction; only row 0 is written
    # (lane-dense (1, TB) block -> 8x less output HBM traffic).
    pred = (jnp.dot(wo_ref[...], h, preferred_element_type=jnp.float32)
            + bo_ref[...])
    out_ref[...] = pred[0:1, :].astype(out_ref.dtype)


def make_ncf_params(key, num_users, num_items, embedding_dim=32,
                    mlp_layers=(64, 32, 16, 8)):
    """Synthetic parameters matching the torch module's shapes.

    Embeddings and MLP weights are stored in bf16 (halves gather/weight HBM
    traffic); biases and the tiny output layer stay f32.
    """
    keys = jax.random.split(key, 2 + 2 * len(mlp_layers) + 2)
    ki = iter(keys)

    def uni(shape, k, scale):
        return jax.random.uniform(k, shape, jnp.float32, -1.0, 1.0) * scale

    params = {
        "user_emb": uni((num_users, embedding_dim), next(ki), 0.1).astype(jnp.bfloat16),
        "item_emb": uni((num_items, embedding_dim), next(ki), 0.1).astype(jnp.bfloat16),
    }
    in_dim = embedding_dim * 2
    ws, bs = [], []
    for out_dim in mlp_layers:
        s = 1.0 / float(in_dim) ** 0.5
        ws.append(uni((in_dim, out_dim), next(ki), s).astype(jnp.bfloat16))
        bs.append(uni((out_dim,), next(ki), s))  # f32
        in_dim = out_dim
    params["mlp_w"] = ws
    params["mlp_b"] = bs
    s = 1.0 / float(mlp_layers[-1]) ** 0.5
    params["out_w"] = uni((mlp_layers[-1], 1), next(ki), s)  # f32
    params["out_b"] = uni((1,), next(ki), s)                 # f32
    return params


def pack_ncf_params(params, embedding_dim=32):
    """One-time transpose + lane padding of the weights for the kernel.

    Invariant: every row of packed["wo"] is an identical replica of the
    (zero-padded) output weight vector -- the kernel stores only row 0.
    """
    E = embedding_dim
    w1, w2, w3, w4 = params["mlp_w"]
    b1, b2, b3, b4 = params["mlp_b"]

    def pad_wT(w, rows=LANE, cols=LANE):
        # (in_dim, out_dim) -> zero-padded transposed (rows, cols) = (out, in).
        out = jnp.zeros((rows, cols), w.dtype)
        return out.at[: w.shape[1], : w.shape[0]].set(w.T)

    def pad_b_col(b):
        out = jnp.zeros((LANE, 1), jnp.float32)
        return out.at[: b.shape[0], 0].set(b.astype(jnp.float32))

    packed = {
        "w1uT": pad_wT(w1[:E], LANE, E),   # (128, E) bf16
        "w1iT": pad_wT(w1[E:], LANE, E),   # (128, E) bf16
        "b1": pad_b_col(b1),
        "w2T": pad_wT(w2), "b2": pad_b_col(b2),
        "w3T": pad_wT(w3), "b3": pad_b_col(b3),
        "w4T": pad_wT(w4), "b4": pad_b_col(b4),
    }
    wo_vec = jnp.zeros((LANE,), jnp.float32).at[: params["out_w"].shape[0]].set(
        params["out_w"][:, 0])
    packed["wo"] = jnp.tile(wo_vec[None, :], (8, 1)).astype(jnp.bfloat16)   # (8, 128)
    packed["bo"] = jnp.full((8, 1), params["out_b"][0], jnp.float32)        # (8, 1)
    return packed


def ncf_forward(params, packed, user_indices, item_indices, *, block_b=4096):
    """NCF forward: XLA embedding gather + fused Pallas batch-on-lanes MLP."""
    B = user_indices.shape[0]
    E = params["user_emb"].shape[1]

    # Batch tile: always a multiple of 128 (lane-major output block), large to
    # amortize per-grid-step overhead (~0.35us), but capped at ceil(B/2)
    # rounded to 128 so the grid keeps >=2 blocks whenever the batch allows it
    # (keeps both TensorCores busy on v7x; no effect on v5e/v6e).
    block_b = max(LANE, (block_b // LANE) * LANE)
    half_batch = _round_up(pl.cdiv(B, 2), LANE)
    TB = max(LANE, min(block_b, half_batch))
    B_pad = _round_up(B, TB)
    pad = B_pad - B

    # Pad indices with 0 (a valid table row); padded rows are dropped after
    # the call.  Any future reduction over the raw output must mask the pad.
    uid = jnp.pad(user_indices, (0, pad))
    iid = jnp.pad(item_indices, (0, pad))

    # Row gather stays in XLA (contiguous 64-byte rows); see TODO at file top
    # about fusing it into the kernel to remove the HBM round trip.
    ue = jnp.take(params["user_emb"], uid, axis=0)  # (B_pad, E) bf16
    ie = jnp.take(params["item_emb"], iid, axis=0)  # (B_pad, E) bf16

    grid = (B_pad // TB,)

    def resident(shape):
        # Constant index_map -> weights/biases stay resident across blocks.
        return pl.BlockSpec(shape, lambda i: (0, 0))

    raw = pl.pallas_call(
        ncf_kernel,
        grid=grid,
        in_specs=[
            pl.BlockSpec((TB, E), lambda i: (i, 0)),   # user embed block
            pl.BlockSpec((TB, E), lambda i: (i, 0)),   # item embed block
            resident((LANE, E)), resident((LANE, E)), resident((LANE, 1)),
            resident((LANE, LANE)), resident((LANE, 1)),
            resident((LANE, LANE)), resident((LANE, 1)),
            resident((LANE, LANE)), resident((LANE, 1)),
            resident((8, LANE)), resident((8, 1)),
        ],
        out_specs=pl.BlockSpec((1, TB), lambda i: (0, i)),
        out_shape=jax.ShapeDtypeStruct((1, B_pad), jnp.float32),
        compiler_params=pltpu.CompilerParams(
            dimension_semantics=("parallel",),
            vmem_limit_bytes=32 * 1024 * 1024),
    )(ue, ie,
      packed["w1uT"], packed["w1iT"], packed["b1"],
      packed["w2T"], packed["b2"],
      packed["w3T"], packed["b3"],
      packed["w4T"], packed["b4"],
      packed["wo"], packed["bo"])

    # Row 0 / first B lanes == prediction.squeeze().
    return raw[0, :B]


if __name__ == "__main__":
    NUM_USERS = 100
    NUM_ITEMS = 200
    EMB_DIM = 32
    BATCH = 8

    key = jax.random.PRNGKey(0)
    k_params, k_users, k_items = jax.random.split(key, 3)

    params = make_ncf_params(k_params, NUM_USERS, NUM_ITEMS, EMB_DIM)
    packed = pack_ncf_params(params, EMB_DIM)

    user_indices = jax.random.randint(k_users, (BATCH,), 0, NUM_USERS, dtype=jnp.int32)
    item_indices = jax.random.randint(k_items, (BATCH,), 0, NUM_ITEMS, dtype=jnp.int32)

    pred = jax.jit(ncf_forward)(params, packed, user_indices, item_indices)
    pred = jax.block_until_ready(pred)

    # Pure-JAX reference of the same math (bf16 weights, f32 accumulation,
    # bf16 activation rounding after every hidden layer, bf16 output weights),
    # mirroring the kernel's numeric path.
    ue = jnp.take(params["user_emb"], user_indices, axis=0).astype(jnp.float32)
    ie = jnp.take(params["item_emb"], item_indices, axis=0).astype(jnp.float32)
    h = jnp.concatenate([ue, ie], axis=-1)
    for w, b in zip(params["mlp_w"], params["mlp_b"]):
        h = jnp.maximum(h @ w.astype(jnp.float32) + b, 0.0)
        h = h.astype(jnp.bfloat16).astype(jnp.float32)
    wo_ref = params["out_w"].astype(jnp.bfloat16).astype(jnp.float32)[:, 0]
    ref = h @ wo_ref + params["out_b"][0]

    assert pred.shape == (BATCH,), pred.shape
    assert jnp.allclose(pred, ref, atol=1e-3, rtol=1e-3), (pred, ref)
    print("KERNEL_OK")
</pallas_src>

<mosaic_0001>
module attributes {stable_mosaic.version = 11 : i64} {
  func.func @ncf_kernel(%arg0: i32, %arg1: memref<128x32xbf16, #tpu.memory_space<vmem>>, %arg2: memref<128x32xbf16, #tpu.memory_space<vmem>>, %arg3: memref<128x32xbf16, #tpu.memory_space<vmem>>, %arg4: memref<128x32xbf16, #tpu.memory_space<vmem>>, %arg5: memref<128x1xf32, #tpu.memory_space<vmem>>, %arg6: memref<128x128xbf16, #tpu.memory_space<vmem>>, %arg7: memref<128x1xf32, #tpu.memory_space<vmem>>, %arg8: memref<128x128xbf16, #tpu.memory_space<vmem>>, %arg9: memref<128x1xf32, #tpu.memory_space<vmem>>, %arg10: memref<128x128xbf16, #tpu.memory_space<vmem>>, %arg11: memref<128x1xf32, #tpu.memory_space<vmem>>, %arg12: memref<8x128xbf16, #tpu.memory_space<vmem>>, %arg13: memref<8x1xf32, #tpu.memory_space<vmem>>, %arg14: memref<1x128xf32, #tpu.memory_space<vmem>>) attributes {dimension_semantics = [#tpu.dimension_semantics<parallel>], iteration_bounds = array<i64: 1>, scalar_prefetch = 0 : i64, scratch_operands = 0 : i64, tpu.core_type = #tpu.core_type<tc>, window_params = [{transform_indices = @transform_0, window_bounds = array<i64: 128, 32>}, {transform_indices = @transform_1, window_bounds = array<i64: 128, 32>}, {pipeline_mode = #tpu.pipeline_mode<synchronous>, transform_indices = @transform_2, window_bounds = array<i64: 128, 32>}, {pipeline_mode = #tpu.pipeline_mode<synchronous>, transform_indices = @transform_3, window_bounds = array<i64: 128, 32>}, {pipeline_mode = #tpu.pipeline_mode<synchronous>, transform_indices = @transform_4, window_bounds = array<i64: 128, 1>}, {pipeline_mode = #tpu.pipeline_mode<synchronous>, transform_indices = @transform_5, window_bounds = array<i64: 128, 128>}, {pipeline_mode = #tpu.pipeline_mode<synchronous>, transform_indices = @transform_6, window_bounds = array<i64: 128, 1>}, {pipeline_mode = #tpu.pipeline_mode<synchronous>, transform_indices = @transform_7, window_bounds = array<i64: 128, 128>}, {pipeline_mode = #tpu.pipeline_mode<synchronous>, transform_indices = @transform_8, window_bounds = array<i64: 128, 1>}, {pipeline_mode = #tpu.pipeline_mode<synchronous>, transform_indices = @transform_9, window_bounds = array<i64: 128, 128>}, {pipeline_mode = #tpu.pipeline_mode<synchronous>, transform_indices = @transform_10, window_bounds = array<i64: 128, 1>}, {pipeline_mode = #tpu.pipeline_mode<synchronous>, transform_indices = @transform_11, window_bounds = array<i64: 8, 128>}, {pipeline_mode = #tpu.pipeline_mode<synchronous>, transform_indices = @transform_12, window_bounds = array<i64: 8, 1>}, {transform_indices = @transform_13, window_bounds = array<i64: 1, 128>}]} {
    %c0 = arith.constant 0 : index
    %c0_0 = arith.constant 0 : index
    %0 = vector.load %arg3[%c0, %c0_0] : memref<128x32xbf16, #tpu.memory_space<vmem>>, vector<128x32xbf16>
    %c0_1 = arith.constant 0 : index
    %c0_2 = arith.constant 0 : index
    %1 = vector.load %arg1[%c0_1, %c0_2] : memref<128x32xbf16, #tpu.memory_space<vmem>>, vector<128x32xbf16>
    "tpu.trace_start"() <{level = 10 : i32, message = "oe,be->ob"}> : () -> ()
    %cst = arith.constant dense<0.000000e+00> : vector<128x128xf32>
    %2 = tpu.matmul %0, %1, %cst {dimension_numbers = #tpu.dot_dimension_numbers<[1], [1], [0], [0], [0, 0, 1, 0], [], []>} : vector<128x32xbf16>, vector<128x32xbf16>, vector<128x128xf32> -> vector<128x128xf32>
    "tpu.trace_stop"() : () -> ()
    %c0_3 = arith.constant 0 : index
    %c0_4 = arith.constant 0 : index
    %3 = vector.load %arg4[%c0_3, %c0_4] : memref<128x32xbf16, #tpu.memory_space<vmem>>, vector<128x32xbf16>
    %c0_5 = arith.constant 0 : index
    %c0_6 = arith.constant 0 : index
    %4 = vector.load %arg2[%c0_5, %c0_6] : memref<128x32xbf16, #tpu.memory_space<vmem>>, vector<128x32xbf16>
    "tpu.trace_start"() <{level = 10 : i32, message = "oe,be->ob"}> : () -> ()
    %cst_7 = arith.constant dense<0.000000e+00> : vector<128x128xf32>
    %5 = tpu.matmul %3, %4, %cst_7 {dimension_numbers = #tpu.dot_dimension_numbers<[1], [1], [0], [0], [0, 0, 1, 0], [], []>} : vector<128x32xbf16>, vector<128x32xbf16>, vector<128x128xf32> -> vector<128x128xf32>
    "tpu.trace_stop"() : () -> ()
    %6 = arith.addf %2, %5 : vector<128x128xf32>
    %c0_8 = arith.constant 0 : index
    %c0_9 = arith.constant 0 : index
    %7 = vector.load %arg5[%c0_8, %c0_9] : memref<128x1xf32, #tpu.memory_space<vmem>>, vector<128x1xf32>
    %8 = vector.broadcast %7 : vector<128x1xf32> to vector<128x128xf32>
    %9 = arith.addf %6, %8 : vector<128x128xf32>
    %cst_10 = arith.constant 0.000000e+00 : f32
    %10 = vector.broadcast %cst_10 : f32 to vector<128x128xf32>
    %11 = arith.maximumf %9, %10 : vector<128x128xf32>
    %12 = arith.truncf %11 : vector<128x128xf32> to vector<128x128xbf16>
    %c0_11 = arith.constant 0 : index
    %c0_12 = arith.constant 0 : index
    %13 = vector.load %arg6[%c0_11, %c0_12] : memref<128x128xbf16, #tpu.memory_space<vmem>>, vector<128x128xbf16>
    %cst_13 = arith.constant dense<0.000000e+00> : vector<128x128xf32>
    %14 = tpu.matmul %13, %12, %cst_13 {dimension_numbers = #tpu.dot_dimension_numbers<[1], [0], [0], [1], [0, 0, 1, 1], [], []>} : vector<128x128xbf16>, vector<128x128xbf16>, vector<128x128xf32> -> vector<128x128xf32>
    %c0_14 = arith.constant 0 : index
    %c0_15 = arith.constant 0 : index
    %15 = vector.load %arg7[%c0_14, %c0_15] : memref<128x1xf32, #tpu.memory_space<vmem>>, vector<128x1xf32>
    %16 = vector.broadcast %15 : vector<128x1xf32> to vector<128x128xf32>
    %17 = arith.addf %14, %16 : vector<128x128xf32>
    %cst_16 = arith.constant 0.000000e+00 : f32
    %18 = vector.broadcast %cst_16 : f32 to vector<128x128xf32>
    %19 = arith.maximumf %17, %18 : vector<128x128xf32>
    %20 = arith.truncf %19 : vector<128x128xf32> to vector<128x128xbf16>
    %c0_17 = arith.constant 0 : index
    %c0_18 = arith.constant 0 : index
    %21 = vector.load %arg8[%c0_17, %c0_18] : memref<128x128xbf16, #tpu.memory_space<vmem>>, vector<128x128xbf16>
    %cst_19 = arith.constant dense<0.000000e+00> : vector<128x128xf32>
    %22 = tpu.matmul %21, %20, %cst_19 {dimension_numbers = #tpu.dot_dimension_numbers<[1], [0], [0], [1], [0, 0, 1, 1], [], []>} : vector<128x128xbf16>, vector<128x128xbf16>, vector<128x128xf32> -> vector<128x128xf32>
    %c0_20 = arith.constant 0 : index
    %c0_21 = arith.constant 0 : index
    %23 = vector.load %arg9[%c0_20, %c0_21] : memref<128x1xf32, #tpu.memory_space<vmem>>, vector<128x1xf32>
    %24 = vector.broadcast %23 : vector<128x1xf32> to vector<128x128xf32>
    %25 = arith.addf %22, %24 : vector<128x128xf32>
    %cst_22 = arith.constant 0.000000e+00 : f32
    %26 = vector.broadcast %cst_22 : f32 to vector<128x128xf32>
    %27 = arith.maximumf %25, %26 : vector<128x128xf32>
    %28 = arith.truncf %27 : vector<128x128xf32> to vector<128x128xbf16>
    %c0_23 = arith.constant 0 : index
    %c0_24 = arith.constant 0 : index
    %29 = vector.load %arg10[%c0_23, %c0_24] : memref<128x128xbf16, #tpu.memory_space<vmem>>, vector<128x128xbf16>
    %cst_25 = arith.constant dense<0.000000e+00> : vector<128x128xf32>
    %30 = tpu.matmul %29, %28, %cst_25 {dimension_numbers = #tpu.dot_dimension_numbers<[1], [0], [0], [1], [0, 0, 1, 1], [], []>} : vector<128x128xbf16>, vector<128x128xbf16>, vector<128x128xf32> -> vector<128x128xf32>
    %c0_26 = arith.constant 0 : index
    %c0_27 = arith.constant 0 : index
    %31 = vector.load %arg11[%c0_26, %c0_27] : memref<128x1xf32, #tpu.memory_space<vmem>>, vector<128x1xf32>
    %32 = vector.broadcast %31 : vector<128x1xf32> to vector<128x128xf32>
    %33 = arith.addf %30, %32 : vector<128x128xf32>
    %cst_28 = arith.constant 0.000000e+00 : f32
    %34 = vector.broadcast %cst_28 : f32 to vector<128x128xf32>
    %35 = arith.maximumf %33, %34 : vector<128x128xf32>
    %36 = arith.truncf %35 : vector<128x128xf32> to vector<128x128xbf16>
    %c0_29 = arith.constant 0 : index
    %c0_30 = arith.constant 0 : index
    %37 = vector.load %arg12[%c0_29, %c0_30] : memref<8x128xbf16, #tpu.memory_space<vmem>>, vector<8x128xbf16>
    %cst_31 = arith.constant dense<0.000000e+00> : vector<8x128xf32>
    %38 = tpu.matmul %37, %36, %cst_31 {dimension_numbers = #tpu.dot_dimension_numbers<[1], [0], [0], [1], [0, 0, 1, 1], [], []>} : vector<8x128xbf16>, vector<128x128xbf16>, vector<8x128xf32> -> vector<8x128xf32>
    %c0_32 = arith.constant 0 : index
    %c0_33 = arith.constant 0 : index
    %39 = vector.load %arg13[%c0_32, %c0_33] : memref<8x1xf32, #tpu.memory_space<vmem>>, vector<8x1xf32>
    %40 = vector.broadcast %39 : vector<8x1xf32> to vector<8x128xf32>
    %41 = arith.addf %38, %40 : vector<8x128xf32>
    %42 = vector.extract_strided_slice %41 {offsets = [0, 0], sizes = [1, 128], strides = [1, 1]} : vector<8x128xf32> to vector<1x128xf32>
    %c0_34 = arith.constant 0 : index
    %c0_35 = arith.constant 0 : index
    %43 = vector.load %arg14[%c0_34, %c0_35] : memref<1x128xf32, #tpu.memory_space<vmem>>, vector<1x128xf32>
    tpu.vector_store %arg14[%c0_34, %c0_35], %42 {strides = array<i32>} : memref<1x128xf32, #tpu.memory_space<vmem>>, vector<1x128xf32>,
    return
  }
  func.func @transform_0(%arg0: i32) -> (i32, i32) {
    %c0_i32 = arith.constant 0 : i32
    %c0_i32_0 = arith.constant 0 : i32
    return %arg0, %c0_i32 : i32, i32
  }
  func.func @transform_1(%arg0: i32) -> (i32, i32) {
    %c0_i32 = arith.constant 0 : i32
    %c0_i32_0 = arith.constant 0 : i32
    return %arg0, %c0_i32 : i32, i32
  }
  func.func @transform_2(%arg0: i32) -> (i32, i32) {
    %c0_i32 = arith.constant 0 : i32
    %c0_i32_0 = arith.constant 0 : i32
    %c0_i32_1 = arith.constant 0 : i32
    return %c0_i32, %c0_i32_0 : i32, i32
  }
  func.func @transform_3(%arg0: i32) -> (i32, i32) {
    %c0_i32 = arith.constant 0 : i32
    %c0_i32_0 = arith.constant 0 : i32
    %c0_i32_1 = arith.constant 0 : i32
    return %c0_i32, %c0_i32_0 : i32, i32
  }
  func.func @transform_4(%arg0: i32) -> (i32, i32) {
    %c0_i32 = arith.constant 0 : i32
    %c0_i32_0 = arith.constant 0 : i32
    %c0_i32_1 = arith.constant 0 : i32
    return %c0_i32, %c0_i32_0 : i32, i32
  }
  func.func @transform_5(%arg0: i32) -> (i32, i32) {
    %c0_i32 = arith.constant 0 : i32
    %c0_i32_0 = arith.constant 0 : i32
    %c0_i32_1 = arith.constant 0 : i32
    return %c0_i32, %c0_i32_0 : i32, i32
  }
  func.func @transform_6(%arg0: i32) -> (i32, i32) {
    %c0_i32 = arith.constant 0 : i32
    %c0_i32_0 = arith.constant 0 : i32
    %c0_i32_1 = arith.constant 0 : i32
    return %c0_i32, %c0_i32_0 : i32, i32
  }
  func.func @transform_7(%arg0: i32) -> (i32, i32) {
    %c0_i32 = arith.constant 0 : i32
    %c0_i32_0 = arith.constant 0 : i32
    %c0_i32_1 = arith.constant 0 : i32
    return %c0_i32, %c0_i32_0 : i32, i32
  }
  func.func @transform_8(%arg0: i32) -> (i32, i32) {
    %c0_i32 = arith.constant 0 : i32
    %c0_i32_0 = arith.constant 0 : i32
    %c0_i32_1 = arith.constant 0 : i32
    return %c0_i32, %c0_i32_0 : i32, i32
  }
  func.func @transform_9(%arg0: i32) -> (i32, i32) {
    %c0_i32 = arith.constant 0 : i32
    %c0_i32_0 = arith.constant 0 : i32
    %c0_i32_1 = arith.constant 0 : i32
    return %c0_i32, %c0_i32_0 : i32, i32
  }
  func.func @transform_10(%arg0: i32) -> (i32, i32) {
    %c0_i32 = arith.constant 0 : i32
    %c0_i32_0 = arith.constant 0 : i32
    %c0_i32_1 = arith.constant 0 : i32
    return %c0_i32, %c0_i32_0 : i32, i32
  }
  func.func @transform_11(%arg0: i32) -> (i32, i32) {
    %c0_i32 = arith.constant 0 : i32
    %c0_i32_0 = arith.constant 0 : i32
    %c0_i32_1 = arith.constant 0 : i32
    return %c0_i32, %c0_i32_0 : i32, i32
  }
  func.func @transform_12(%arg0: i32) -> (i32, i32) {
    %c0_i32 = arith.constant 0 : i32
    %c0_i32_0 = arith.constant 0 : i32
    %c0_i32_1 = arith.constant 0 : i32
    return %c0_i32, %c0_i32_0 : i32, i32
  }
  func.func @transform_13(%arg0: i32) -> (i32, i32) {
    %c0_i32 = arith.constant 0 : i32
    %c0_i32_0 = arith.constant 0 : i32
    return %c0_i32, %arg0 : i32, i32
  }
}

</mosaic_0001>

<bundles_post_ra>
// kernel: ncf_forward.1
= control target key start
LH: loop header
LB: loop body
LE: loop exit
PB: predicated region body
PF: predicated region fallthrough
CT: control target
= control target key end

     0   :  { %vm189_vm0 = vcmask 261120   ;;  %v2025_v1 = vmov 0   ;;  %vm2027_vm1 = vmmov 0   ;;  %s2524_s1 = inlined_call_operand.vmem [shape: bf16[128,32], index: 1, kind: input, shape index: {}]   ;;  %s2525_s3 = inlined_call_operand.vmem [shape: bf16[128,32], index: 3, kind: input, shape index: {}]   ;;  %s2526_s0 = inlined_call_operand.vmem [shape: bf16[128,32], index: 0, kind: input, shape index: {}]   ;;  %s2527_s4 = inlined_call_operand.vmem [shape: f32[128,1], index: 4, kind: input, shape index: {}]   ;;  %s2528_s2 = inlined_call_operand.vmem [shape: bf16[128,32], index: 2, kind: input, shape index: {}]   ;;  %s2529_s6 = inlined_call_operand.vmem [shape: f32[128,1], index: 6, kind: input, shape index: {}]   ;;  %s2530_s8 = inlined_call_operand.vmem [shape: f32[128,1], index: 8, kind: input, shape index: {}]   ;;  %s2531_s10 = inlined_call_operand.vmem [shape: f32[128,1], index: 10, kind: input, shape index: {}]   ;;  %s2532_s12 = inlined_call_operand.vmem [shape: f32[8,1], index: 12, kind: input, shape index: {}]   ;;  %s2533_s5 = inlined_call_operand.vmem [shape: bf16[128,128], index: 5, kind: input, shape index: {}]   ;;  %s2534_s7 = inlined_call_operand.vmem [shape: bf16[128,128], index: 7, kind: input, shape index: {}]   ;;  %s2535_s9 = inlined_call_operand.vmem [shape: bf16[128,128], index: 9, kind: input, shape index: {}]   ;;  %s2536_s11 = inlined_call_operand.vmem [shape: bf16[8,128], index: 11, kind: input, shape index: {}]   ;;  %s2537_s13 = inlined_call_operand.vmem [shape: f32[1,128], index: 13, kind: output, shape index: {}]  }
   0x1   :  { %v1969_v0 = vld [vmem:[%s2524_s1] sm:$0xff]   ;;  %1967 = vset.pattern.permute.xlu0 %v2025_v1  ;;  %1968 = vset.pattern.permute.xlu1 %v2025_v1  ;;  %v1970_v2 = vld [vmem:[%s2524_s1 + $0x8] sm:$0xff]   ;;  %v1971_v4 = vld [vmem:[%s2524_s1 + $0x10] sm:$0xff]  }
   0x2   :  { %1948 = vmatprep.subr.msk.bf16.mxu0 %vm189_vm0, %v1969_v0  ;;  %v215_v3 = vsel %vm189_vm0, %v1969_v0, 0  ;;  %v218_v5 = vsel %vm189_vm0, %v1970_v2, 0  ;;  %v1977_v6 = vld [vmem:[%s2525_s3] sm:$0xff]   ;;  %v562_v8 = vld [vmem:[%s2527_s4 + $0x10] sm:$0xff]  ;;  %v1972_v9 = vld [vmem:[%s2524_s1 + $0x18] sm:$0xff]   ;;  %v221_v11 = vsel %vm189_vm0, %v1971_v4, 0 }
   0x3   :  { %1753 = vmatpush3.bf16.xpose.msra.mxu0 %v215_v3  ;;  %1768 = vmatprep.mubr.msk.bf16.mxu0 %vm189_vm0, %v1977_v6  ;;  %v560_v7 = vld [vmem:[%s2527_s4] sm:$0xff]  ;;  %v561_v10 = vld [vmem:[%s2527_s4 + $0x8] sm:$0xff]  ;;  %v563_v12 = vld [vmem:[%s2527_s4 + $0x18] sm:$0xff]  ;;  %v224_v17 = vsel %vm189_vm0, %v1972_v9, 0 }
   0x4   :  { %1949 = vmatprep.subr.msk.bf16.mxu0 %vm189_vm0, %v1970_v2  ;;  %578 = vperm.xlu0 %1967, %v560_v7   ;;  %v564_v13 = vld [vmem:[%s2527_s4 + $0x20] sm:$0xff]  ;;  %v565_v14 = vld [vmem:[%s2527_s4 + $0x28] sm:$0xff]  ;;  %v566_v16 = vld [vmem:[%s2527_s4 + $0x30] sm:$0xff] }
   0x5   :  { %588 = vperm.xlu1 %1968, %v562_v8   ;;  %v1973_v15 = vld [vmem:[%s2524_s1 + $0x20] sm:$0xff]   ;;  %v567_v18 = vld [vmem:[%s2527_s4 + $0x38] sm:$0xff]  ;;  %v569_v20 = vld [vmem:[%s2527_s4 + $0x48] sm:$0xff] }
   0x6   :  { %v568_v19 = vld [vmem:[%s2527_s4 + $0x40] sm:$0xff]  ;;  %v1974_v21 = vld [vmem:[%s2524_s1 + $0x28] sm:$0xff]   ;;  %v570_v22 = vld [vmem:[%s2527_s4 + $0x50] sm:$0xff]  ;;  %v227_v23 = vsel %vm189_vm0, %v1973_v15, 0 }
   0x7   :  { %v571_v24 = vld [vmem:[%s2527_s4 + $0x58] sm:$0xff]  ;;  %v572_v25 = vld [vmem:[%s2527_s4 + $0x60] sm:$0xff]  ;;  %v573_v26 = vld [vmem:[%s2527_s4 + $0x68] sm:$0xff]  ;;  %v230_v28 = vsel %vm189_vm0, %v1974_v21, 0 }
   0x8   :  { %583 = vperm.xlu0 %1967, %v561_v10   ;;  %v574_v27 = vld [vmem:[%s2527_s4 + $0x70] sm:$0xff]  ;;  %v575_v30 = vld [vmem:[%s2527_s4 + $0x78] sm:$0xff]  ;;  %v712_v31 = vld [vmem:[%s2529_s6] sm:$0xff] }
   0x9   :  { %593 = vperm.xlu1 %1968, %v563_v12   ;;  %v1975_v29 = vld [vmem:[%s2524_s1 + $0x30] sm:$0xff]   ;;  %v713_v32 = vld [vmem:[%s2529_s6 + $0x8] sm:$0xff]  ;;  %v1976_v35 = vld [vmem:[%s2524_s1 + $0x38] sm:$0xff]  }
   0xa   :  { %v714_v33 = vld [vmem:[%s2529_s6 + $0x10] sm:$0xff]  ;;  %v233_v34 = vsel %vm189_vm0, %v1975_v29, 0  ;;  %v715_v36 = vld [vmem:[%s2529_s6 + $0x18] sm:$0xff]  ;;  %v716_v37 = vld [vmem:[%s2529_s6 + $0x20] sm:$0xff]  ;;  %v236_v40 = vsel %vm189_vm0, %v1976_v35, 0 }
   0xb   :  { %1755 = vmatpush3.bf16.xpose.msra.mxu0 %v218_v5  ;;  %v717_v38 = vld [vmem:[%s2529_s6 + $0x28] sm:$0xff]  ;;  %v718_v39 = vld [vmem:[%s2529_s6 + $0x30] sm:$0xff]  ;;  %v1978_v41 = vld [vmem:[%s2526_s0] sm:$0xff]  }
   0xc   :  { %1950 = vmatprep.subr.msk.bf16.mxu0 %vm189_vm0, %v1971_v4  ;;  %598 = vperm.xlu0 %1967, %v564_v13   ;;  %v719_v42 = vld [vmem:[%s2529_s6 + $0x38] sm:$0xff]  ;;  %v720_v43 = vld [vmem:[%s2529_s6 + $0x40] sm:$0xff]  ;;  %v721_v44 = vld [vmem:[%s2529_s6 + $0x48] sm:$0xff]  ;;  %v440_v48 = vsel %vm189_vm0, %v1978_v41, 0 }
   0xd   :  { %603 = vperm.xlu1 %1968, %v565_v14   ;;  %v1979_v45 = vld [vmem:[%s2525_s3 + $0x8] sm:$0xff]   ;;  %v1984_v46 = vld [vmem:[%s2525_s3 + $0x10] sm:$0xff]   ;;  %v723_v50 = vld [vmem:[%s2529_s6 + $0x58] sm:$0xff] }
   0xe   :  { %v722_v47 = vld [vmem:[%s2529_s6 + $0x50] sm:$0xff]  ;;  %v1980_v49 = vld [vmem:[%s2526_s0 + $0x8] sm:$0xff]   ;;  %v724_v51 = vld [vmem:[%s2529_s6 + $0x60] sm:$0xff] }
   0xf   :  { %v725_v52 = vld [vmem:[%s2529_s6 + $0x68] sm:$0xff]  ;;  %v1985_v53 = vld [vmem:[%s2525_s3 + $0x18] sm:$0xff]   ;;  %v1987_v54 = vld [vmem:[%s2525_s3 + $0x20] sm:$0xff]   ;;  %v443_v56 = vsel %vm189_vm0, %v1980_v49, 0 }
  0x10   :  { %608 = vperm.xlu0 %1967, %v566_v16   ;;  %v726_v55 = vld [vmem:[%s2529_s6 + $0x70] sm:$0xff]  ;;  %v727_v58 = vld [vmem:[%s2529_s6 + $0x78] sm:$0xff]  ;;  %v993_v59 = vld [vmem:[%s2530_s8] sm:$0xff] }
  0x11   :  { %613 = vperm.xlu1 %1968, %v567_v18   ;;  %v1981_v57 = vld [vmem:[%s2526_s0 + $0x10] sm:$0xff]   ;;  %v994_v60 = vld [vmem:[%s2530_s8 + $0x8] sm:$0xff]  ;;  %v1982_v1 = vld [vmem:[%s2526_s0 + $0x18] sm:$0xff]  }
  0x12   :  { %v1988_v61 = vld [vmem:[%s2525_s3 + $0x28] sm:$0xff]   ;;  %v1990_v62 = vld [vmem:[%s2525_s3 + $0x30] sm:$0xff]   ;;  %v446_v0 = vsel %vm189_vm0, %v1981_v57, 0  ;;  %v996_v2 = vld [vmem:[%s2530_s8 + $0x18] sm:$0xff]  ;;  %v449_v8 = vsel %vm189_vm0, %v1982_v1, 0 }
  0x13   :  { %1757 = vmatpush3.bf16.xpose.msra.mxu0 %v221_v11  ;;  %v995_v63 = vld [vmem:[%s2530_s8 + $0x10] sm:$0xff]  ;;  %v997_v3 = vld [vmem:[%s2530_s8 + $0x20] sm:$0xff]  ;;  %v998_v4 = vld [vmem:[%s2530_s8 + $0x28] sm:$0xff] }
  0x14   :  { %1951 = vmatprep.subr.msk.bf16.mxu0 %vm189_vm0, %v1972_v9  ;;  %618 = vperm.xlu0 %1967, %v568_v19   ;;  %v1991_v5 = vld [vmem:[%s2525_s3 + $0x38] sm:$0xff]   ;;  %v1993_v6 = vld [vmem:[%s2528_s2] sm:$0xff]   ;;  %v999_v7 = vld [vmem:[%s2530_s8 + $0x30] sm:$0xff] }
  0x15   :  { %623 = vperm.xlu1 %1968, %v569_v20   ;;  %v1983_v9 = vld [vmem:[%s2526_s0 + $0x20] sm:$0xff]   ;;  %v1000_v10 = vld [vmem:[%s2530_s8 + $0x38] sm:$0xff]  ;;  %v1002_v12 = vld [vmem:[%s2530_s8 + $0x48] sm:$0xff] }
  0x16   :  { %v1001_v11 = vld [vmem:[%s2530_s8 + $0x40] sm:$0xff]  ;;  %v1003_v13 = vld [vmem:[%s2530_s8 + $0x50] sm:$0xff]  ;;  %v452_v14 = vsel %vm189_vm0, %v1983_v9, 0  ;;  %v1004_v16 = vld [vmem:[%s2530_s8 + $0x58] sm:$0xff] }
  0x17   :  { %v1006_v18 = vld [vmem:[%s2530_s8 + $0x68] sm:$0xff]  ;;  %v1007_v19 = vld [vmem:[%s2530_s8 + $0x70] sm:$0xff] }
  0x18   :  { %628 = vperm.xlu0 %1967, %v570_v22   ;;  %v1008_v22 = vld [vmem:[%s2530_s8 + $0x78] sm:$0xff] }
  0x19   :  { %633 = vperm.xlu1 %1968, %v571_v24   ;;  %v1275_v24 = vld [vmem:[%s2531_s10 + $0x8] sm:$0xff] }
  0x1b   :  { %1759 = vmatpush3.bf16.xpose.msra.mxu0 %v224_v17  ;;  %v1005_v17 = vld [vmem:[%s2530_s8 + $0x60] sm:$0xff] }
  0x1c   :  { %1952 = vmatprep.subr.msk.bf16.mxu0 %vm189_vm0, %v1973_v15  ;;  %638 = vperm.xlu0 %1967, %v572_v25   ;;  %v1986_v15 = vld [vmem:[%s2526_s0 + $0x28] sm:$0xff]   ;;  %v1276_v25 = vld [vmem:[%s2531_s10 + $0x10] sm:$0xff] }
  0x1d   :  { %643 = vperm.xlu1 %1968, %v573_v26   ;;  %v455_v20 = vsel %vm189_vm0, %v1986_v15, 0 }
  0x20   :  { %648 = vperm.xlu0 %1967, %v574_v27   ;;  %v1992_v27 = vld [vmem:[%s2526_s0 + $0x38] sm:$0xff]  }
  0x21   :  { %653 = vperm.xlu1 %1968, %v575_v30   ;;  %v1279_v30 = vld [vmem:[%s2531_s10 + $0x28] sm:$0xff] }
  0x23   :  { %1761 = vmatpush3.bf16.xpose.msra.mxu0 %v227_v23  ;;  %v1274_v23 = vld [vmem:[%s2531_s10] sm:$0xff] }
  0x24   :  { %1953 = vmatprep.subr.msk.bf16.mxu0 %vm189_vm0, %v1974_v21  ;;  %730 = vperm.xlu0 %1967, %v712_v31   ;;  %v1989_v21 = vld [vmem:[%s2526_s0 + $0x30] sm:$0xff]  }
  0x25   :  { %735 = vperm.xlu1 %1968, %v713_v32   ;;  %v458_v26 = vsel %vm189_vm0, %v1989_v21, 0  ;;  %v1280_v31 = vld [vmem:[%s2531_s10 + $0x30] sm:$0xff]  ;;  %v461_v32 = vsel %vm189_vm0, %v1992_v27, 0 }
  0x28   :  { %740 = vperm.xlu0 %1967, %v714_v33   ;;  %v1281_v33 = vld [vmem:[%s2531_s10 + $0x38] sm:$0xff] }
  0x29   :  { %745 = vperm.xlu1 %1968, %v715_v36   ;;  %v1994_v36 = vld [vmem:[%s2528_s2 + $0x8] sm:$0xff]  }
  0x2b   :  { %1763 = vmatpush3.bf16.xpose.msra.mxu0 %v230_v28  ;;  %v1277_v28 = vld [vmem:[%s2531_s10 + $0x18] sm:$0xff] }
  0x2c   :  { %1954 = vmatprep.subr.msk.bf16.mxu0 %vm189_vm0, %v1975_v29  ;;  %750 = vperm.xlu0 %1967, %v716_v37   ;;  %v1278_v29 = vld [vmem:[%s2531_s10 + $0x20] sm:$0xff]  ;;  %v1995_v37 = vld [vmem:[%s2528_s2 + $0x10] sm:$0xff]  }
  0x2d   :  { %755 = vperm.xlu1 %1968, %v717_v38   ;;  %v1284_v38 = vld [vmem:[%s2531_s10 + $0x50] sm:$0xff] }
  0x30   :  { %760 = vperm.xlu0 %1967, %v718_v39   ;;  %v1285_v39 = vld [vmem:[%s2531_s10 + $0x58] sm:$0xff] }
  0x31   :  { %765 = vperm.xlu1 %1968, %v719_v42   ;;  %v1996_v42 = vld [vmem:[%s2528_s2 + $0x18] sm:$0xff]  }
  0x33   :  { %1765 = vmatpush3.bf16.xpose.msra.mxu0 %v233_v34  ;;  %v1282_v34 = vld [vmem:[%s2531_s10 + $0x40] sm:$0xff] }
  0x34   :  { %1955 = vmatprep.subr.msk.bf16.mxu0 %vm189_vm0, %v1976_v35  ;;  %770 = vperm.xlu0 %1967, %v720_v43   ;;  %v1283_v35 = vld [vmem:[%s2531_s10 + $0x48] sm:$0xff]  ;;  %v1997_v43 = vld [vmem:[%s2528_s2 + $0x20] sm:$0xff]  }
  0x35   :  { %775 = vperm.xlu1 %1968, %v721_v44   ;;  %v1288_v44 = vld [vmem:[%s2531_s10 + $0x70] sm:$0xff] }
  0x38   :  { %780 = vperm.xlu0 %1967, %v722_v47   ;;  %v1998_v47 = vld [vmem:[%s2528_s2 + $0x28] sm:$0xff]  }
  0x39   :  { %785 = vperm.xlu1 %1968, %v723_v50   ;;  %v2001_v50 = vld [vmem:[%s2533_s5] sm:$0xff]  }
  0x3a   :  { %1832 = vmatprep.mubr.bf16.mxu1 %v2001_v50 }
  0x3b   :  { %1767 = vmatpush3.bf16.xpose.msra.mxu0 %v236_v40  ;;  %v1286_v40 = vld [vmem:[%s2531_s10 + $0x60] sm:$0xff] }
  0x3c   :  { %1956 = vmatprep.subr.msk.bf16.mxu0 %vm189_vm0, %v1978_v41  ;;  %790 = vperm.xlu0 %1967, %v724_v51   ;;  %v1287_v41 = vld [vmem:[%s2531_s10 + $0x68] sm:$0xff] }
  0x3d   :  { %795 = vperm.xlu1 %1968, %v725_v52  }
  0x40   :  { %800 = vperm.xlu0 %1967, %v726_v55  }
  0x41   :  { %805 = vperm.xlu1 %1968, %v727_v58  }
  0x42   :  { %1769 = vmatmul.mubr.msk.bf16.vlgmr.msra.gmra.mrb[0].mxu0 %vm189_vm0, %v1979_v45  ;;  %v1289_v45 = vld [vmem:[%s2531_s10 + $0x78] sm:$0xff] }
  0x43   :  { %1785 = vmatpush3.bf16.xpose.msra.mxu0 %v440_v48  ;;  %1772 = vmatprep.mubr.msk.bf16.mxu0 %vm189_vm0, %v1984_v46  ;;  %v1540_v46 = vld [vmem:[%s2532_s12] sm:$0xff]  ;;  %v1999_v48 = vld [vmem:[%s2528_s2 + $0x30] sm:$0xff]  }
  0x44   :  { %1957 = vmatprep.subr.msk.bf16.mxu0 %vm189_vm0, %v1980_v49  ;;  %1011 = vperm.xlu0 %1967, %v993_v59   ;;  %v2000_v49 = vld [vmem:[%s2528_s2 + $0x38] sm:$0xff]  }
  0x45   :  { %1016 = vperm.xlu1 %1968, %v994_v60  }
  0x48   :  { %1021 = vperm.xlu0 %1967, %v995_v63  }
  0x49   :  { %1026 = vperm.xlu1 %1968, %v996_v2  }
  0x4a   :  { %1773 = vmatmul.mubr.msk.bf16.gmra.mrb[4].mxu0 %vm189_vm0, %v1985_v53 }
  0x4b   :  { %1787 = vmatpush3.bf16.xpose.msra.mxu0 %v443_v56  ;;  %1776 = vmatprep.mubr.msk.bf16.mxu0 %vm189_vm0, %v1987_v54 }
  0x4c   :  { %1958 = vmatprep.subr.msk.bf16.mxu0 %vm189_vm0, %v1981_v57  ;;  %1031 = vperm.xlu0 %1967, %v997_v3  }
  0x4d   :  { %1036 = vperm.xlu1 %1968, %v998_v4  }
  0x50   :  { %1041 = vperm.xlu0 %1967, %v999_v7  }
  0x51   :  { %1046 = vperm.xlu1 %1968, %v1000_v10  }
  0x52   :  { %1777 = vmatmul.mubr.msk.bf16.gmra.mrb[8].mxu0 %vm189_vm0, %v1988_v61 }
  0x53   :  { %1789 = vmatpush3.bf16.xpose.msra.mxu0 %v446_v0  ;;  %1780 = vmatprep.mubr.msk.bf16.mxu0 %vm189_vm0, %v1990_v62 }
  0x54   :  { %1959 = vmatprep.subr.msk.bf16.mxu0 %vm189_vm0, %v1982_v1  ;;  %1051 = vperm.xlu0 %1967, %v1001_v11  }
  0x55   :  { %1056 = vperm.xlu1 %1968, %v1002_v12  }
  0x58   :  { %1061 = vperm.xlu0 %1967, %v1003_v13  }
  0x59   :  { %1066 = vperm.xlu1 %1968, %v1004_v16  }
  0x5a   :  { %1781 = vmatmul.mubr.msk.bf16.gmra.mrb[12].mxu0 %vm189_vm0, %v1991_v5 }
  0x5b   :  { %1791 = vmatpush3.bf16.xpose.msra.mxu0 %v449_v8  ;;  %1800 = vmatprep.mubr.msk.bf16.mxu0 %vm189_vm0, %v1993_v6 }
  0x5c   :  { %1960 = vmatprep.subr.msk.bf16.mxu0 %vm189_vm0, %v1983_v9  ;;  %1071 = vperm.xlu0 %1967, %v1005_v17  }
  0x5d   :  { %1076 = vperm.xlu1 %1968, %v1006_v18  }
  0x60   :  { %1081 = vperm.xlu0 %1967, %v1007_v19  }
  0x61   :  { %1086 = vperm.xlu1 %1968, %v1008_v22  }
  0x63   :  { %1793 = vmatpush3.bf16.xpose.msra.mxu0 %v452_v14 }
  0x64   :  { %1961 = vmatprep.subr.msk.bf16.mxu0 %vm189_vm0, %v1986_v15  ;;  %1292 = vperm.xlu0 %1967, %v1274_v23  }
  0x65   :  { %1297 = vperm.xlu1 %1968, %v1275_v24  }
  0x68   :  { %1302 = vperm.xlu0 %1967, %v1276_v25  }
  0x69   :  { %1307 = vperm.xlu1 %1968, %v1277_v28  }
  0x6b   :  { %1795 = vmatpush3.bf16.xpose.msra.mxu0 %v455_v20 }
  0x6c   :  { %1962 = vmatprep.subr.msk.bf16.mxu0 %vm189_vm0, %v1989_v21  ;;  %1312 = vperm.xlu0 %1967, %v1278_v29  }
  0x6d   :  { %1317 = vperm.xlu1 %1968, %v1279_v30  }
  0x70   :  { %1322 = vperm.xlu0 %1967, %v1280_v31  }
  0x71   :  { %1327 = vperm.xlu1 %1968, %v1281_v33  }
  0x73   :  { %1797 = vmatpush3.bf16.xpose.msra.mxu0 %v458_v26 }
  0x74   :  { %1963 = vmatprep.subr.msk.bf16.mxu0 %vm189_vm0, %v1992_v27  ;;  %1332 = vperm.xlu0 %1967, %v1282_v34  }
  0x75   :  { %1337 = vperm.xlu1 %1968, %v1283_v35  }
  0x78   :  { %1342 = vperm.xlu0 %1967, %v1284_v38  }
  0x79   :  { %1347 = vperm.xlu1 %1968, %v1285_v39  }
  0x7b   :  { %1799 = vmatpush3.bf16.xpose.msra.mxu0 %v461_v32 }
  0x7c   :  { %1352 = vperm.xlu0 %1967, %v1286_v40  }
  0x7d   :  { %1357 = vperm.xlu1 %1968, %v1287_v41  }
  0x80   :  { %1362 = vperm.xlu0 %1967, %v1288_v44  }
  0x81   :  { %1367 = vperm.xlu1 %1968, %v1289_v45  }
  0x82   :  { %1801 = vmatmul.mubr.msk.bf16.vlgmr.msra.gmra.mrb[0].mxu0 %vm189_vm0, %v1994_v36 }
  0x83   :  { %1804 = vmatprep.mubr.msk.bf16.mxu0 %vm189_vm0, %v1995_v37  ;;  %v579_v51 = vpop.permute.xlu0 %578 }
  0x84   :  { %1543 = vperm.xlu0 %1967, %v1540_v46   ;;  %v589_v52 = vpop.permute.xlu1 %588 }
  0x87   :  { %v584_v53 = vpop.permute.xlu0 %583 }
  0x88   :  { %v594_v54 = vpop.permute.xlu1 %593 }
  0x8a   :  { %1805 = vmatmul.mubr.msk.bf16.gmra.mrb[4].mxu0 %vm189_vm0, %v1996_v42 }
  0x8b   :  { %1808 = vmatprep.mubr.msk.bf16.mxu0 %vm189_vm0, %v1997_v43  ;;  %v599_v55 = vpop.permute.xlu0 %598 }
  0x8c   :  { %v604_v56 = vpop.permute.xlu1 %603 }
  0x8f   :  { %v609_v57 = vpop.permute.xlu0 %608 }
  0x90   :  { %v614_v61 = vpop.permute.xlu1 %613 }
  0x92   :  { %1809 = vmatmul.mubr.msk.bf16.gmra.mrb[8].mxu0 %vm189_vm0, %v1998_v47 }
  0x93   :  { %1812 = vmatprep.mubr.msk.bf16.mxu0 %vm189_vm0, %v1999_v48  ;;  %v619_v5 = vpop.permute.xlu0 %618 }
  0x94   :  { %v624_v9 = vpop.permute.xlu1 %623 }
  0x97   :  { %v629_v18 = vpop.permute.xlu0 %628 }
  0x98   :  { %v634_v22 = vpop.permute.xlu1 %633 }
  0x9a   :  { %1813 = vmatmul.mubr.msk.bf16.gmra.mrb[12].mxu0 %vm189_vm0, %v2000_v49 }
  0x9b   :  { %v639_v30 = vpop.permute.xlu0 %638 }
  0x9c   :  { %v644_v35 = vpop.permute.xlu1 %643 }
  0x9f   :  { %v649_v42 = vpop.permute.xlu0 %648 }
  0xa0   :  { %v654_v47 = vpop.permute.xlu1 %653 }
 0x155   :  { %v1802_v58 = vpop.f32.mrb[0].mxu0 }
 0x156   :  { %v658_v59 = vadd.f32 %v1802_v58, %v589_v52  ;;  %v497_v60 = vpop.f32.mrb[1].mxu0 }
 0x157   :  { %v656_v62 = vadd.f32 %v579_v51, %v497_v60  ;;  %v1803_v63 = vpop.f32.mrb[2].mxu0  ;;  %v2003_v60 = vld [vmem:[%s2533_s5 + $0x10] sm:$0xff]  }
 0x158   :  { %v659_v0 = vadd.f32 %v1803_v63, %v594_v54  ;;  %v500_v1 = vpop.f32.mrb[3].mxu0  ;;  %v674_v3 = vmax.f32 %v658_v59, 0.0  ;;  %v2002_v59 = vld [vmem:[%s2533_s5 + $0x8] sm:$0xff]  }
 0x159   :  { %v657_v2 = vadd.f32 %v584_v53, %v500_v1  ;;  %v672_v6 = vmax.f32 %v656_v62, 0.0  ;;  %v2005_v62 = vld [vmem:[%s2533_s5 + $0x20] sm:$0xff]   ;;  %v2006_v63 = vld [vmem:[%s2533_s5 + $0x28] sm:$0xff]   ;;  %v2008_v1 = vld [vmem:[%s2533_s5 + $0x38] sm:$0xff]  }
 0x15a   :  { %v675_v4 = vmax.f32 %v659_v0, 0.0  ;;  %v2007_v0 = vld [vmem:[%s2533_s5 + $0x30] sm:$0xff]  }
 0x15b   :  { %v673_v7 = vmax.f32 %v657_v2, 0.0  ;;  %v2009_v2 = vld [vmem:[%s2534_s7] sm:$0xff]  }
 0x15c   :  { %v689_v8 = vpack.c.bf16 %v675_v4, %v674_v3  ;;  %v731_v3 = vpop.permute.xlu0 %730  ;;  %v736_v4 = vpop.permute.xlu1 %735 }
 0x15d   :  { %v1806_v10 = vpop.f32.mrb[4].mxu0  ;;  %v688_v11 = vpack.c.bf16 %v673_v7, %v672_v6 }
 0x15e   :  { %v662_v12 = vadd.f32 %v1806_v10, %v609_v57  ;;  %v513_v13 = vpop.f32.mrb[5].mxu0 }
 0x15f   :  { %v660_v14 = vadd.f32 %v599_v55, %v513_v13  ;;  %v1807_v15 = vpop.f32.mrb[6].mxu0  ;;  %1816 = vmatprep.subr.bf16.mxu1 %v688_v11 }
 0x160   :  { %v663_v16 = vadd.f32 %v1807_v15, %v614_v61  ;;  %v516_v17 = vpop.f32.mrb[7].mxu0  ;;  %1817 = vmatpush3.bf16.msra.mxu1 %v688_v11  ;;  %v678_v20 = vmax.f32 %v662_v12, 0.0  ;;  %v2004_v61 = vld [vmem:[%s2533_s5 + $0x18] sm:$0xff]   ;;  %v746_v6 = vpop.permute.xlu1 %745 }
 0x161   :  { %v661_v19 = vadd.f32 %v604_v56, %v516_v17  ;;  %1818 = vmatprep.subr.bf16.mxu1 %v689_v8  ;;  %v676_v23 = vmax.f32 %v660_v14, 0.0 }
 0x162   :  { %v679_v21 = vmax.f32 %v663_v16, 0.0 }
 0x163   :  { %v677_v24 = vmax.f32 %v661_v19, 0.0 }
 0x164   :  { %v691_v25 = vpack.c.bf16 %v679_v21, %v678_v20  ;;  %1819 = vmatpush3.bf16.msra.mxu1 %v689_v8  ;;  %v756_v8 = vpop.permute.xlu1 %755 }
 0x165   :  { %v690_v26 = vpack.c.bf16 %v677_v24, %v676_v23  ;;  %v1810_v27 = vpop.f32.mrb[8].mxu0 }
 0x166   :  { %v666_v28 = vadd.f32 %v1810_v27, %v629_v18  ;;  %v529_v29 = vpop.f32.mrb[9].mxu0 }
 0x167   :  { %v664_v31 = vadd.f32 %v619_v5, %v529_v29  ;;  %v1811_v32 = vpop.f32.mrb[10].mxu0  ;;  %1820 = vmatprep.subr.bf16.mxu1 %v690_v26  ;;  %v741_v5 = vpop.permute.xlu0 %740 }
 0x168   :  { %v667_v33 = vadd.f32 %v1811_v32, %v634_v22  ;;  %v532_v34 = vpop.f32.mrb[11].mxu0  ;;  %1821 = vmatpush3.bf16.msra.mxu1 %v690_v26  ;;  %v682_v37 = vmax.f32 %v666_v28, 0.0  ;;  %v766_v13 = vpop.permute.xlu1 %765 }
 0x169   :  { %v665_v36 = vadd.f32 %v624_v9, %v532_v34  ;;  %1822 = vmatprep.subr.bf16.mxu1 %v691_v25  ;;  %v680_v39 = vmax.f32 %v664_v31, 0.0 }
 0x16a   :  { %v683_v38 = vmax.f32 %v667_v33, 0.0 }
 0x16b   :  { %v681_v40 = vmax.f32 %v665_v36, 0.0  ;;  %v751_v7 = vpop.permute.xlu0 %750 }
 0x16c   :  { %v693_v41 = vpack.c.bf16 %v683_v38, %v682_v37  ;;  %1823 = vmatpush3.bf16.msra.mxu1 %v691_v25  ;;  %v776_v25 = vpop.permute.xlu1 %775 }
 0x16d   :  { %v692_v43 = vpack.c.bf16 %v681_v40, %v680_v39  ;;  %v1814_v44 = vpop.f32.mrb[12].mxu0 }
 0x16e   :  { %v670_v45 = vadd.f32 %v1814_v44, %v649_v42  ;;  %v545_v46 = vpop.f32.mrb[13].mxu0 }
 0x16f   :  { %v668_v48 = vadd.f32 %v639_v30, %v545_v46  ;;  %v1815_v49 = vpop.f32.mrb[14].mxu0  ;;  %1824 = vmatprep.subr.bf16.mxu1 %v692_v43  ;;  %v761_v9 = vpop.permute.xlu0 %760 }
 0x170   :  { %v671_v50 = vadd.f32 %v1815_v49, %v654_v47  ;;  %v548_v51 = vpop.f32.mrb[15].mxu0  ;;  %1825 = vmatpush3.bf16.msra.mxu1 %v692_v43  ;;  %v686_v53 = vmax.f32 %v670_v45, 0.0  ;;  %v786_v38 = vpop.permute.xlu1 %785 }
 0x171   :  { %v669_v52 = vadd.f32 %v644_v35, %v548_v51  ;;  %1826 = vmatprep.subr.bf16.mxu1 %v693_v41  ;;  %v684_v55 = vmax.f32 %v668_v48, 0.0 }
 0x172   :  { %v687_v54 = vmax.f32 %v671_v50, 0.0 }
 0x173   :  { %v685_v56 = vmax.f32 %v669_v52, 0.0  ;;  %v771_v21 = vpop.permute.xlu0 %770 }
 0x174   :  { %v695_v57 = vpack.c.bf16 %v687_v54, %v686_v53  ;;  %1827 = vmatpush3.bf16.msra.mxu1 %v693_v41  ;;  %v796_v51 = vpop.permute.xlu1 %795 }
 0x175   :  { %v694_v58 = vpack.c.bf16 %v685_v56, %v684_v55 }
 0x177   :  { %1828 = vmatprep.subr.bf16.mxu1 %v694_v58  ;;  %v781_v34 = vpop.permute.xlu0 %780 }
 0x178   :  { %1829 = vmatpush3.bf16.msra.mxu1 %v694_v58 }
 0x179   :  { %1830 = vmatprep.subr.bf16.mxu1 %v695_v57 }
 0x17b   :  { %v791_v46 = vpop.permute.xlu0 %790 }
 0x17c   :  { %1831 = vmatpush3.bf16.msra.mxu1 %v695_v57 }
 0x17f   :  { %1833 = vmatmul.mubr.bf16.vlgmr.msra.gmra.mrb[0].mxu1 %v2002_v59  ;;  %v801_v58 = vpop.permute.xlu0 %800 }
 0x180   :  { %1836 = vmatprep.mubr.bf16.mxu1 %v2003_v60 }
 0x187   :  { %1837 = vmatmul.mubr.bf16.gmra.mrb[4].mxu1 %v2004_v61 }
 0x188   :  { %1840 = vmatprep.mubr.bf16.mxu1 %v2005_v62 }
 0x18f   :  { %1841 = vmatmul.mubr.bf16.gmra.mrb[8].mxu1 %v2006_v63  ;;  %v806_v63 = vpop.permute.xlu1 %805 }
 0x190   :  { %1844 = vmatprep.mubr.bf16.mxu1 %v2007_v0 }
 0x197   :  { %1845 = vmatmul.mubr.bf16.gmra.mrb[12].mxu1 %v2008_v1 }
 0x198   :  { %1864 = vmatprep.mubr.bf16.mxu1 %v2009_v2 }
 0x252   :  { %v1834_v10 = vpop.f32.mrb[0].mxu1 }
 0x253   :  { %v899_v11 = vadd.f32 %v1834_v10, %v741_v5  ;;  %v890_v12 = vpop.f32.mrb[1].mxu1 }
 0x254   :  { %v891_v14 = vadd.f32 %v890_v12, %v731_v3  ;;  %v1835_v15 = vpop.f32.mrb[2].mxu1  ;;  %v2011_v12 = vld [vmem:[%s2534_s7 + $0x10] sm:$0xff]  }
 0x255   :  { %v902_v16 = vadd.f32 %v1835_v15, %v746_v6  ;;  %v893_v17 = vpop.f32.mrb[3].mxu1  ;;  %v955_v19 = vmax.f32 %v899_v11, 0.0  ;;  %v2010_v11 = vld [vmem:[%s2534_s7 + $0x8] sm:$0xff]  }
 0x256   :  { %v894_v18 = vadd.f32 %v893_v17, %v736_v4  ;;  %v953_v22 = vmax.f32 %v891_v14, 0.0  ;;  %v2013_v14 = vld [vmem:[%s2534_s7 + $0x20] sm:$0xff]   ;;  %v2014_v15 = vld [vmem:[%s2534_s7 + $0x28] sm:$0xff]   ;;  %v2016_v17 = vld [vmem:[%s2534_s7 + $0x38] sm:$0xff]  }
 0x257   :  { %v956_v20 = vmax.f32 %v902_v16, 0.0  ;;  %v2015_v16 = vld [vmem:[%s2534_s7 + $0x30] sm:$0xff]  }
 0x258   :  { %v954_v23 = vmax.f32 %v894_v18, 0.0  ;;  %v2017_v18 = vld [vmem:[%s2535_s9] sm:$0xff]  }
 0x259   :  { %v970_v24 = vpack.c.bf16 %v956_v20, %v955_v19  ;;  %v1012_v19 = vpop.permute.xlu0 %1011  ;;  %v1017_v20 = vpop.permute.xlu1 %1016 }
 0x25a   :  { %v969_v26 = vpack.c.bf16 %v954_v23, %v953_v22  ;;  %v1838_v27 = vpop.f32.mrb[4].mxu1 }
 0x25b   :  { %v915_v28 = vadd.f32 %v1838_v27, %v761_v9  ;;  %v906_v29 = vpop.f32.mrb[5].mxu1 }
 0x25c   :  { %v907_v30 = vadd.f32 %v906_v29, %v751_v7  ;;  %v1839_v31 = vpop.f32.mrb[6].mxu1  ;;  %1848 = vmatprep.subr.bf16.mxu1 %v969_v26 }
 0x25d   :  { %v918_v32 = vadd.f32 %v1839_v31, %v766_v13  ;;  %v909_v33 = vpop.f32.mrb[7].mxu1  ;;  %1849 = vmatpush3.bf16.msra.mxu1 %v969_v26  ;;  %v959_v36 = vmax.f32 %v915_v28, 0.0  ;;  %v2012_v13 = vld [vmem:[%s2534_s7 + $0x18] sm:$0xff]   ;;  %v1027_v22 = vpop.permute.xlu1 %1026 }
 0x25e   :  { %v910_v35 = vadd.f32 %v909_v33, %v756_v8  ;;  %1850 = vmatprep.subr.bf16.mxu1 %v970_v24  ;;  %v957_v39 = vmax.f32 %v907_v30, 0.0 }
 0x25f   :  { %v960_v37 = vmax.f32 %v918_v32, 0.0 }
 0x260   :  { %v958_v40 = vmax.f32 %v910_v35, 0.0 }
 0x261   :  { %v972_v41 = vpack.c.bf16 %v960_v37, %v959_v36  ;;  %1851 = vmatpush3.bf16.msra.mxu1 %v970_v24  ;;  %v1037_v24 = vpop.permute.xlu1 %1036 }
 0x262   :  { %v971_v42 = vpack.c.bf16 %v958_v40, %v957_v39  ;;  %v1842_v43 = vpop.f32.mrb[8].mxu1 }
 0x263   :  { %v931_v44 = vadd.f32 %v1842_v43, %v781_v34  ;;  %v922_v45 = vpop.f32.mrb[9].mxu1 }
 0x264   :  { %v923_v47 = vadd.f32 %v922_v45, %v771_v21  ;;  %v1843_v48 = vpop.f32.mrb[10].mxu1  ;;  %1852 = vmatprep.subr.bf16.mxu1 %v971_v42  ;;  %v1022_v21 = vpop.permute.xlu0 %1021 }
 0x265   :  { %v934_v49 = vadd.f32 %v1843_v48, %v786_v38  ;;  %v925_v50 = vpop.f32.mrb[11].mxu1  ;;  %1853 = vmatpush3.bf16.msra.mxu1 %v971_v42  ;;  %v963_v53 = vmax.f32 %v931_v44, 0.0  ;;  %v1047_v29 = vpop.permute.xlu1 %1046 }
 0x266   :  { %v926_v52 = vadd.f32 %v925_v50, %v776_v25  ;;  %1854 = vmatprep.subr.bf16.mxu1 %v972_v41  ;;  %v961_v55 = vmax.f32 %v923_v47, 0.0 }
 0x267   :  { %v964_v54 = vmax.f32 %v934_v49, 0.0 }
 0x268   :  { %v962_v56 = vmax.f32 %v926_v52, 0.0  ;;  %v1032_v23 = vpop.permute.xlu0 %1031 }
 0x269   :  { %v974_v57 = vpack.c.bf16 %v964_v54, %v963_v53  ;;  %1855 = vmatpush3.bf16.msra.mxu1 %v972_v41  ;;  %v1057_v41 = vpop.permute.xlu1 %1056 }
 0x26a   :  { %v973_v59 = vpack.c.bf16 %v962_v56, %v961_v55  ;;  %v1846_v60 = vpop.f32.mrb[12].mxu1 }
 0x26b   :  { %v947_v61 = vadd.f32 %v1846_v60, %v801_v58  ;;  %v938_v62 = vpop.f32.mrb[13].mxu1 }
 0x26c   :  { %v939_v0 = vadd.f32 %v938_v62, %v791_v46  ;;  %v1847_v1 = vpop.f32.mrb[14].mxu1  ;;  %1856 = vmatprep.subr.bf16.mxu1 %v973_v59  ;;  %v1042_v25 = vpop.permute.xlu0 %1041 }
 0x26d   :  { %v950_v2 = vadd.f32 %v1847_v1, %v806_v63  ;;  %v941_v3 = vpop.f32.mrb[15].mxu1  ;;  %1857 = vmatpush3.bf16.msra.mxu1 %v973_v59  ;;  %v967_v5 = vmax.f32 %v947_v61, 0.0  ;;  %v1067_v54 = vpop.permute.xlu1 %1066 }
 0x26e   :  { %v942_v4 = vadd.f32 %v941_v3, %v796_v51  ;;  %1858 = vmatprep.subr.bf16.mxu1 %v974_v57  ;;  %v965_v7 = vmax.f32 %v939_v0, 0.0 }
 0x26f   :  { %v968_v6 = vmax.f32 %v950_v2, 0.0 }
 0x270   :  { %v966_v8 = vmax.f32 %v942_v4, 0.0  ;;  %v1052_v37 = vpop.permute.xlu0 %1051 }
 0x271   :  { %v976_v9 = vpack.c.bf16 %v968_v6, %v967_v5  ;;  %1859 = vmatpush3.bf16.msra.mxu1 %v974_v57  ;;  %v1077_v3 = vpop.permute.xlu1 %1076 }
 0x272   :  { %v975_v10 = vpack.c.bf16 %v966_v8, %v965_v7 }
 0x274   :  { %1860 = vmatprep.subr.bf16.mxu1 %v975_v10  ;;  %v1062_v50 = vpop.permute.xlu0 %1061 }
 0x275   :  { %1861 = vmatpush3.bf16.msra.mxu1 %v975_v10 }
 0x276   :  { %1862 = vmatprep.subr.bf16.mxu1 %v976_v9 }
 0x278   :  { %v1072_v62 = vpop.permute.xlu0 %1071 }
 0x279   :  { %1863 = vmatpush3.bf16.msra.mxu1 %v976_v9 }
 0x27c   :  { %1865 = vmatmul.mubr.bf16.vlgmr.msra.gmra.mrb[16].mxu1 %v2010_v11  ;;  %v1082_v10 = vpop.permute.xlu0 %1081 }
 0x27d   :  { %1868 = vmatprep.mubr.bf16.mxu1 %v2011_v12 }
 0x284   :  { %1869 = vmatmul.mubr.bf16.gmra.mrb[20].mxu1 %v2012_v13 }
 0x285   :  { %1872 = vmatprep.mubr.bf16.mxu1 %v2013_v14 }
 0x28c   :  { %1873 = vmatmul.mubr.bf16.gmra.mrb[24].mxu1 %v2014_v15  ;;  %v1087_v15 = vpop.permute.xlu1 %1086 }
 0x28d   :  { %1876 = vmatprep.mubr.bf16.mxu1 %v2015_v16 }
 0x294   :  { %1877 = vmatmul.mubr.bf16.gmra.mrb[28].mxu1 %v2016_v17 }
 0x295   :  { %1896 = vmatprep.mubr.bf16.mxu1 %v2017_v18 }
 0x34f   :  { %v1866_v26 = vpop.f32.mrb[16].mxu1 }
 0x350   :  { %v1180_v27 = vadd.f32 %v1866_v26, %v1022_v21  ;;  %v1171_v28 = vpop.f32.mrb[17].mxu1 }
 0x351   :  { %v1172_v30 = vadd.f32 %v1171_v28, %v1012_v19  ;;  %v1867_v31 = vpop.f32.mrb[18].mxu1  ;;  %v2019_v28 = vld [vmem:[%s2535_s9 + $0x10] sm:$0xff]  }
 0x352   :  { %v1183_v32 = vadd.f32 %v1867_v31, %v1027_v22  ;;  %v1174_v33 = vpop.f32.mrb[19].mxu1  ;;  %v1236_v35 = vmax.f32 %v1180_v27, 0.0  ;;  %v2018_v27 = vld [vmem:[%s2535_s9 + $0x8] sm:$0xff]  }
 0x353   :  { %v1175_v34 = vadd.f32 %v1174_v33, %v1017_v20  ;;  %v1234_v38 = vmax.f32 %v1172_v30, 0.0  ;;  %v2021_v30 = vld [vmem:[%s2535_s9 + $0x20] sm:$0xff]   ;;  %v2022_v31 = vld [vmem:[%s2535_s9 + $0x28] sm:$0xff]   ;;  %v2024_v33 = vld [vmem:[%s2535_s9 + $0x38] sm:$0xff]  }
 0x354   :  { %v1237_v36 = vmax.f32 %v1183_v32, 0.0  ;;  %v2023_v32 = vld [vmem:[%s2535_s9 + $0x30] sm:$0xff]  }
 0x355   :  { %v1235_v39 = vmax.f32 %v1175_v34, 0.0  ;;  %v2026_v34 = vmov 0.0  }
 0x356   :  { %v1251_v40 = vpack.c.bf16 %v1237_v36, %v1236_v35  ;;  %v1293_v35 = vpop.permute.xlu0 %1292  ;;  %v1298_v36 = vpop.permute.xlu1 %1297 }
 0x357   :  { %v1250_v42 = vpack.c.bf16 %v1235_v39, %v1234_v38  ;;  %v1870_v43 = vpop.f32.mrb[20].mxu1 }
 0x358   :  { %v1196_v44 = vadd.f32 %v1870_v43, %v1042_v25  ;;  %v1187_v45 = vpop.f32.mrb[21].mxu1 }
 0x359   :  { %v1188_v46 = vadd.f32 %v1187_v45, %v1032_v23  ;;  %v1871_v47 = vpop.f32.mrb[22].mxu1  ;;  %1880 = vmatprep.subr.bf16.mxu1 %v1250_v42 }
 0x35a   :  { %v1199_v48 = vadd.f32 %v1871_v47, %v1047_v29  ;;  %v1190_v49 = vpop.f32.mrb[23].mxu1  ;;  %1881 = vmatpush3.bf16.msra.mxu1 %v1250_v42  ;;  %v1240_v52 = vmax.f32 %v1196_v44, 0.0  ;;  %v2020_v29 = vld [vmem:[%s2535_s9 + $0x18] sm:$0xff]   ;;  %v1308_v38 = vpop.permute.xlu1 %1307 }
 0x35b   :  { %v1191_v51 = vadd.f32 %v1190_v49, %v1037_v24  ;;  %1882 = vmatprep.subr.bf16.mxu1 %v1251_v40  ;;  %v1238_v55 = vmax.f32 %v1188_v46, 0.0 }
 0x35c   :  { %v1241_v53 = vmax.f32 %v1199_v48, 0.0 }
 0x35d   :  { %v1239_v56 = vmax.f32 %v1191_v51, 0.0 }
 0x35e   :  { %v1253_v57 = vpack.c.bf16 %v1241_v53, %v1240_v52  ;;  %1883 = vmatpush3.bf16.msra.mxu1 %v1251_v40  ;;  %v1318_v40 = vpop.permute.xlu1 %1317 }
 0x35f   :  { %v1252_v58 = vpack.c.bf16 %v1239_v56, %v1238_v55  ;;  %v1874_v59 = vpop.f32.mrb[24].mxu1 }
 0x360   :  { %v1212_v60 = vadd.f32 %v1874_v59, %v1062_v50  ;;  %v1203_v61 = vpop.f32.mrb[25].mxu1 }
 0x361   :  { %v1204_v63 = vadd.f32 %v1203_v61, %v1052_v37  ;;  %v1875_v0 = vpop.f32.mrb[26].mxu1  ;;  %1884 = vmatprep.subr.bf16.mxu1 %v1252_v58  ;;  %v1303_v37 = vpop.permute.xlu0 %1302 }
 0x362   :  { %v1215_v1 = vadd.f32 %v1875_v0, %v1067_v54  ;;  %v1206_v2 = vpop.f32.mrb[27].mxu1  ;;  %1885 = vmatpush3.bf16.msra.mxu1 %v1252_v58  ;;  %v1244_v5 = vmax.f32 %v1212_v60, 0.0  ;;  %v1328_v45 = vpop.permute.xlu1 %1327 }
 0x363   :  { %v1207_v4 = vadd.f32 %v1206_v2, %v1057_v41  ;;  %1886 = vmatprep.subr.bf16.mxu1 %v1253_v57  ;;  %v1242_v7 = vmax.f32 %v1204_v63, 0.0 }
 0x364   :  { %v1245_v6 = vmax.f32 %v1215_v1, 0.0 }
 0x365   :  { %v1243_v8 = vmax.f32 %v1207_v4, 0.0  ;;  %v1313_v39 = vpop.permute.xlu0 %1312 }
 0x366   :  { %v1255_v9 = vpack.c.bf16 %v1245_v6, %v1244_v5  ;;  %1887 = vmatpush3.bf16.msra.mxu1 %v1253_v57  ;;  %v1338_v57 = vpop.permute.xlu1 %1337 }
 0x367   :  { %v1254_v11 = vpack.c.bf16 %v1243_v8, %v1242_v7  ;;  %v1878_v12 = vpop.f32.mrb[28].mxu1 }
 0x368   :  { %v1228_v13 = vadd.f32 %v1878_v12, %v1082_v10  ;;  %v1219_v14 = vpop.f32.mrb[29].mxu1 }
 0x369   :  { %v1220_v16 = vadd.f32 %v1219_v14, %v1072_v62  ;;  %v1879_v17 = vpop.f32.mrb[30].mxu1  ;;  %1888 = vmatprep.subr.bf16.mxu1 %v1254_v11  ;;  %v1323_v41 = vpop.permute.xlu0 %1322 }
 0x36a   :  { %v1231_v18 = vadd.f32 %v1879_v17, %v1087_v15  ;;  %v1222_v19 = vpop.f32.mrb[31].mxu1  ;;  %1889 = vmatpush3.bf16.msra.mxu1 %v1254_v11  ;;  %v1248_v21 = vmax.f32 %v1228_v13, 0.0  ;;  %v1348_v6 = vpop.permute.xlu1 %1347 }
 0x36b   :  { %v1223_v20 = vadd.f32 %v1222_v19, %v1077_v3  ;;  %1890 = vmatprep.subr.bf16.mxu1 %v1255_v9  ;;  %v1246_v23 = vmax.f32 %v1220_v16, 0.0 }
 0x36c   :  { %v1249_v22 = vmax.f32 %v1231_v18, 0.0 }
 0x36d   :  { %v1247_v24 = vmax.f32 %v1223_v20, 0.0  ;;  %v1333_v53 = vpop.permute.xlu0 %1332 }
 0x36e   :  { %v1257_v25 = vpack.c.bf16 %v1249_v22, %v1248_v21  ;;  %1891 = vmatpush3.bf16.msra.mxu1 %v1255_v9  ;;  %v1358_v19 = vpop.permute.xlu1 %1357 }
 0x36f   :  { %v1256_v26 = vpack.c.bf16 %v1247_v24, %v1246_v23 }
 0x371   :  { %1892 = vmatprep.subr.bf16.mxu1 %v1256_v26  ;;  %v1343_v2 = vpop.permute.xlu0 %1342 }
 0x372   :  { %1893 = vmatpush3.bf16.msra.mxu1 %v1256_v26 }
 0x373   :  { %1894 = vmatprep.subr.bf16.mxu1 %v1257_v25 }
 0x375   :  { %v1353_v14 = vpop.permute.xlu0 %1352 }
 0x376   :  { %1895 = vmatpush3.bf16.msra.mxu1 %v1257_v25 }
 0x377   :  { %1912 = vmatprep.subr.bf16.mxu1 %v2026_v34 }
 0x379   :  { %1897 = vmatmul.mubr.bf16.vlgmr.msra.gmra.mrb[32].mxu1 %v2018_v27  ;;  %v1363_v26 = vpop.permute.xlu0 %1362 }
 0x37a   :  { %1900 = vmatprep.mubr.bf16.mxu1 %v2019_v28 }
 0x381   :  { %1901 = vmatmul.mubr.bf16.gmra.mrb[36].mxu1 %v2020_v29 }
 0x382   :  { %1904 = vmatprep.mubr.bf16.mxu1 %v2021_v30 }
 0x389   :  { %1905 = vmatmul.mubr.bf16.gmra.mrb[40].mxu1 %v2022_v31  ;;  %v1368_v31 = vpop.permute.xlu1 %1367 }
 0x38a   :  { %1908 = vmatprep.mubr.bf16.mxu1 %v2023_v32 }
 0x391   :  { %1909 = vmatmul.mubr.bf16.gmra.mrb[44].mxu1 %v2024_v33 }
 0x392   :  { %1928 = vmatprep.mubr.msk.bf16.mxu1 %vm2027_vm1, %v2026_v34 }
 0x44c   :  { %v1898_v42 = vpop.f32.mrb[32].mxu1 }
 0x44d   :  { %v1461_v43 = vadd.f32 %v1898_v42, %v1303_v37  ;;  %v1452_v44 = vpop.f32.mrb[33].mxu1 }
 0x44e   :  { %v1453_v46 = vadd.f32 %v1452_v44, %v1293_v35  ;;  %v1899_v47 = vpop.f32.mrb[34].mxu1  ;;  %v1539_v44 = vld [vmem:[%s2536_s11] sm:$0xf] }
 0x44f   :  { %v1464_v48 = vadd.f32 %v1899_v47, %v1308_v38  ;;  %v1455_v49 = vpop.f32.mrb[35].mxu1  ;;  %v1517_v51 = vmax.f32 %v1461_v43, 0.0 }
 0x450   :  { %v1456_v50 = vadd.f32 %v1455_v49, %v1298_v36  ;;  %v1515_v54 = vmax.f32 %v1453_v46, 0.0 }
 0x451   :  { %v1518_v52 = vmax.f32 %v1464_v48, 0.0 }
 0x452   :  { %v1516_v55 = vmax.f32 %v1456_v50, 0.0 }
 0x453   :  { %v1532_v56 = vpack.c.bf16 %v1518_v52, %v1517_v51 }
 0x454   :  { %v1531_v58 = vpack.c.bf16 %v1516_v55, %v1515_v54  ;;  %v1902_v59 = vpop.f32.mrb[36].mxu1 }
 0x455   :  { %v1477_v60 = vadd.f32 %v1902_v59, %v1323_v41  ;;  %v1468_v61 = vpop.f32.mrb[37].mxu1 }
 0x456   :  { %v1469_v62 = vadd.f32 %v1468_v61, %v1313_v39  ;;  %v1903_v63 = vpop.f32.mrb[38].mxu1  ;;  %1913 = vmatpush3.bf16.msra.mxu1 %v1531_v58 }
 0x457   :  { %v1480_v0 = vadd.f32 %v1903_v63, %v1328_v45  ;;  %v1471_v1 = vpop.f32.mrb[39].mxu1  ;;  %1914 = vmatprep.subr.bf16.mxu1 %v2026_v34  ;;  %v1521_v4 = vmax.f32 %v1477_v60, 0.0  ;;  %v1544_v45 = vpop.permute.xlu0 %1543 }
 0x458   :  { %v1472_v3 = vadd.f32 %v1471_v1, %v1318_v40  ;;  %v1519_v7 = vmax.f32 %v1469_v62, 0.0 }
 0x459   :  { %v1522_v5 = vmax.f32 %v1480_v0, 0.0 }
 0x45a   :  { %v1520_v8 = vmax.f32 %v1472_v3, 0.0  ;;  %1915 = vmatpush3.bf16.msra.mxu1 %v1532_v56 }
 0x45b   :  { %v1534_v9 = vpack.c.bf16 %v1522_v5, %v1521_v4  ;;  %1916 = vmatprep.subr.bf16.mxu1 %v2026_v34 }
 0x45c   :  { %v1533_v10 = vpack.c.bf16 %v1520_v8, %v1519_v7  ;;  %v1906_v11 = vpop.f32.mrb[40].mxu1 }
 0x45d   :  { %v1493_v12 = vadd.f32 %v1906_v11, %v1343_v2  ;;  %v1484_v13 = vpop.f32.mrb[41].mxu1 }
 0x45e   :  { %v1485_v15 = vadd.f32 %v1484_v13, %v1333_v53  ;;  %v1907_v16 = vpop.f32.mrb[42].mxu1  ;;  %1917 = vmatpush3.bf16.msra.mxu1 %v1533_v10 }
 0x45f   :  { %v1496_v17 = vadd.f32 %v1907_v16, %v1348_v6  ;;  %v1487_v18 = vpop.f32.mrb[43].mxu1  ;;  %1918 = vmatprep.subr.bf16.mxu1 %v2026_v34  ;;  %v1525_v21 = vmax.f32 %v1493_v12, 0.0 }
 0x460   :  { %v1488_v20 = vadd.f32 %v1487_v18, %v1338_v57  ;;  %v1523_v23 = vmax.f32 %v1485_v15, 0.0 }
 0x461   :  { %v1526_v22 = vmax.f32 %v1496_v17, 0.0 }
 0x462   :  { %v1524_v24 = vmax.f32 %v1488_v20, 0.0  ;;  %1919 = vmatpush3.bf16.msra.mxu1 %v1534_v9 }
 0x463   :  { %v1536_v25 = vpack.c.bf16 %v1526_v22, %v1525_v21  ;;  %1920 = vmatprep.subr.bf16.mxu1 %v2026_v34 }
 0x464   :  { %v1535_v27 = vpack.c.bf16 %v1524_v24, %v1523_v23  ;;  %v1910_v28 = vpop.f32.mrb[44].mxu1 }
 0x465   :  { %v1509_v29 = vadd.f32 %v1910_v28, %v1363_v26  ;;  %v1500_v30 = vpop.f32.mrb[45].mxu1 }
 0x466   :  { %v1501_v32 = vadd.f32 %v1500_v30, %v1353_v14  ;;  %v1911_v33 = vpop.f32.mrb[46].mxu1  ;;  %1921 = vmatpush3.bf16.msra.mxu1 %v1535_v27 }
 0x467   :  { %v1512_v35 = vadd.f32 %v1911_v33, %v1368_v31  ;;  %v1503_v36 = vpop.f32.mrb[47].mxu1  ;;  %1922 = vmatprep.subr.bf16.mxu1 %v2026_v34  ;;  %v1529_v38 = vmax.f32 %v1509_v29, 0.0 }
 0x468   :  { %v1504_v37 = vadd.f32 %v1503_v36, %v1358_v19  ;;  %v1527_v40 = vmax.f32 %v1501_v32, 0.0 }
 0x469   :  { %v1530_v39 = vmax.f32 %v1512_v35, 0.0 }
 0x46a   :  { %v1528_v41 = vmax.f32 %v1504_v37, 0.0  ;;  %1923 = vmatpush3.bf16.msra.mxu1 %v1536_v25 }
 0x46b   :  { %v1538_v42 = vpack.c.bf16 %v1530_v39, %v1529_v38  ;;  %1924 = vmatprep.subr.bf16.mxu1 %v2026_v34 }
 0x46c   :  { %v1537_v43 = vpack.c.bf16 %v1528_v41, %v1527_v40 }
 0x46e   :  { %1925 = vmatpush3.bf16.msra.mxu1 %v1537_v43 }
 0x46f   :  { %1926 = vmatprep.subr.bf16.mxu1 %v2026_v34 }
 0x472   :  { %1927 = vmatpush3.bf16.msra.mxu1 %v1538_v42 }
 0x475   :  { %1929 = vmatmul.mubr.bf16.vlgmr.msra.gmra.mrb[48].mxu1 %v1539_v44 }
 0x548   :  { %v1580_v46 = vpop.f32.mrb[48].mxu1 }
 0x549   :  { %v1581_v47 = vadd.f32 %v1580_v46, %v1544_v45  ;;  %v1930_v48 = vpop.f32.mrb[49].mxu1 }
 0x54a   :  { %v1583_v49 = vpop.f32.mrb[50].mxu1 }
 0x54b   :  { %1586 = vst [vmem:[%s2537_s13] sm:$0x1] %v1581_v47  ;;  %v1931_v50 = vpop.f32.mrb[51].mxu1 }

</bundles_post_ra>
